<compile_context>
chip_gen: v7x
topology: tpu7x:2x2x1
jax: 0.10.0
libtpu: 0.0.40
codegen_flags: <defaults>
</compile_context>

<pallas_src>
import functools

import jax
import jax.numpy as jnp
from jax.experimental import pallas as pl
from jax.experimental.pallas import tpu as pltpu


OUT_LANES = 128  # packed, unmasked-store output: lane 0 = quadratic, lane 1 = linear


def fm_kernel(idx_ref, tab_ref, out_ref, gbuf_ref, *, num_feats, num_factor, tile_b):
    """FM forward for one batch tile.

    idx_ref:  (B*N,)        int32, SMEM (scalar-prefetched), offset-adjusted ids.
    tab_ref:  (C_pad, Kp)   f32, VMEM-resident fused table
              (cols [0, K) = quadratic factors, col K = linear weight, rest 0).
    out_ref:  (TILE_B, 128) f32 packed output block.
    gbuf_ref: (N*TILE_B, Kp) f32 VMEM scratch, feature-major gather buffer
              (row n*TILE_B + b holds the embedding of feature n of sample b).
    """
    n_feats = num_feats
    k = num_factor
    tb = tile_b
    kp = tab_ref.shape[1]

    batch_start = pl.program_id(0) * tb

    # --- Gather: one dynamic row copy per (sample, feature) --------------
    def gather_body(b, carry):
        src_base = (batch_start + b) * n_feats
        for n in range(n_feats):  # N is a small compile-time constant
            row_id = idx_ref[src_base + n]
            gbuf_ref[pl.ds(n * tb + b, 1), :] = tab_ref[pl.ds(row_id, 1), :]
        return carry

    jax.lax.fori_loop(0, tb, gather_body, 0)

    # --- Pool over features: sum of N statically-sliced (TILE_B, Kp) slabs ---
    v = gbuf_ref[pl.ds(0, tb), :]
    sum_f = v
    sum_sq = v * v
    for n in range(1, n_feats):
        v = gbuf_ref[pl.ds(n * tb, tb), :]
        sum_f = sum_f + v
        sum_sq = sum_sq + v * v

    # --- FM terms; keep the linear / pad lanes out of the quadratic sum ---
    lane = jax.lax.broadcasted_iota(jnp.int32, (tb, kp), 1)
    quad_terms = jnp.where(lane < k, sum_f * sum_f - sum_sq, 0.0)
    quad = 0.5 * jnp.sum(quad_terms, axis=1, keepdims=True)                  # (tb, 1)
    lin = jnp.sum(jnp.where(lane == k, sum_f, 0.0), axis=1, keepdims=True)   # (tb, 1)

    olane = jax.lax.broadcasted_iota(jnp.int32, (tb, out_ref.shape[1]), 1)
    out_ref[...] = jnp.where(olane == 0, quad, jnp.where(olane == 1, lin, 0.0))


def quadratic_fm_forward(indices, q_table, l_table, global_bias, num_classes,
                         *, tile_b=None):
    """Returns (quadratic, linear, bias), each of shape (B,), matching the module."""
    B, N = indices.shape
    C, K = q_table.shape

    # Fold per-feature offsets into the ids, flatten to (B*N,) for SMEM prefetch.
    nc = jnp.asarray(num_classes, jnp.int32)
    offsets = jnp.concatenate([jnp.zeros((1,), jnp.int32), jnp.cumsum(nc)[:-1]])
    flat_idx = (indices.astype(jnp.int32) + offsets[None, :]).reshape(B * N)

    # Fused, lane/sublane-padded table: [quadratic | linear | zero pad].
    Kp = ((K + 1 + 127) // 128) * 128
    C_pad = ((C + 7) // 8) * 8
    fused = jnp.zeros((C_pad, Kp), jnp.float32)
    fused = fused.at[:C, :K].set(q_table.astype(jnp.float32))
    fused = fused.at[:C, K].set(l_table[:, 0].astype(jnp.float32))

    if tile_b is None:
        tile_b = B if B <= 128 else 128
    assert B % tile_b == 0, "batch must be divisible by the batch tile"
    grid = (B // tile_b,)

    # VMEM budget: resident table + gather scratch + double-buffered output,
    # kept well inside v7x's 64 MiB per-TensorCore VMEM.
    needed = 4 * (C_pad * Kp + 2 * N * tile_b * Kp + 4 * tile_b * OUT_LANES)
    vmem_limit = int(min(max(needed + (8 << 20), 32 << 20), 48 << 20))

    kernel = functools.partial(fm_kernel, num_feats=N, num_factor=K, tile_b=tile_b)
    out = pl.pallas_call(
        kernel,
        out_shape=jax.ShapeDtypeStruct((B, OUT_LANES), jnp.float32),
        grid_spec=pltpu.PrefetchScalarGridSpec(
            num_scalar_prefetch=1,                                     # flat_idx -> SMEM
            grid=grid,
            in_specs=[
                pl.BlockSpec((C_pad, Kp), lambda i, idx: (0, 0)),      # table, resident
            ],
            out_specs=pl.BlockSpec((tile_b, OUT_LANES), lambda i, idx: (i, 0)),
            scratch_shapes=[pltpu.VMEM((N * tile_b, Kp), jnp.float32)],
        ),
        compiler_params=pltpu.CompilerParams(
            dimension_semantics=("parallel",),
            vmem_limit_bytes=vmem_limit,
        ),
    )(flat_idx, fused)

    quad = out[:, 0]
    lin = out[:, 1]
    # Bias is a pure broadcast of a scalar parameter; no kernel needed.
    bias = jnp.broadcast_to(global_bias.astype(jnp.float32), (B,))
    return quad, lin, bias


def reference_forward(indices, q_table, l_table, global_bias, num_classes):
    """Pure-JAX replica of the PyTorch forward for correctness checking."""
    B, N = indices.shape
    nc = jnp.asarray(num_classes, jnp.int32)
    offsets = jnp.concatenate([jnp.zeros((1,), jnp.int32), jnp.cumsum(nc)[:-1]])
    flat = indices.astype(jnp.int32) + offsets[None, :]
    qe = q_table[flat]                      # (B, N, K)
    le = l_table[flat][..., 0]              # (B, N)
    linear = le.sum(axis=1)
    square_of_sum = qe.sum(axis=1) ** 2
    sum_of_square = (qe ** 2).sum(axis=1)
    quadratic = 0.5 * (square_of_sum - sum_of_square).sum(axis=1)
    bias = jnp.broadcast_to(global_bias, (B,))
    return quadratic, linear, bias


if __name__ == "__main__":
    # Small, module-consistent shapes.
    num_classes = (7, 5, 11, 3)        # N = 4 categorical features
    num_factor = 32
    B = 8
    N = len(num_classes)
    C = int(sum(num_classes))

    key = jax.random.PRNGKey(0)
    k_idx, k_q, k_l = jax.random.split(key, 3)

    q_table = jax.random.normal(k_q, (C, num_factor), jnp.float32) * 0.1
    l_table = jax.random.normal(k_l, (C, 1), jnp.float32) * 0.1
    global_bias = jnp.full((1,), 0.37, jnp.float32)   # nn.Parameter(torch.zeros(1)) shape

    cols = []
    for card in num_classes:
        k_idx, sub = jax.random.split(k_idx)
        cols.append(jax.random.randint(sub, (B, 1), 0, card, jnp.int32))
    indices = jnp.concatenate(cols, axis=1)            # (B, N) int32

    quad, lin, bias = quadratic_fm_forward(indices, q_table, l_table,
                                           global_bias, num_classes)
    jax.block_until_ready((quad, lin, bias))

    quad_r, lin_r, bias_r = reference_forward(indices, q_table, l_table,
                                              global_bias, num_classes)
    assert jnp.allclose(quad, quad_r, atol=1e-5), (quad, quad_r)
    assert jnp.allclose(lin, lin_r, atol=1e-5), (lin, lin_r)
    assert jnp.allclose(bias, bias_r, atol=1e-6), (bias, bias_r)

    print("KERNEL_OK")
</pallas_src>

<mosaic_0001>
module attributes {stable_mosaic.version = 11 : i64} {
  func.func @fm_kernel(%arg0: i32, %arg1: memref<32xi32, #tpu.memory_space<smem>>, %arg2: memref<32x128xf32, #tpu.memory_space<vmem>>, %arg3: memref<8x128xf32, #tpu.memory_space<vmem>>, %arg4: memref<32x128xf32, #tpu.memory_space<vmem>>) attributes {dimension_semantics = [#tpu.dimension_semantics<parallel>], iteration_bounds = array<i64: 1>, scalar_prefetch = 1 : i64, scratch_operands = 1 : i64, tpu.core_type = #tpu.core_type<tc>, window_params = [{pipeline_mode = #tpu.pipeline_mode<synchronous>, transform_indices = @transform_0, window_bounds = array<i64: 32, 128>}, {transform_indices = @transform_1, window_bounds = array<i64: 8, 128>}]} {
    %c8_i32 = arith.constant 8 : i32
    %0 = arith.muli %arg0, %c8_i32 : i32
    %c0_i32 = arith.constant 0 : i32
    %c8_i32_0 = arith.constant 8 : i32
    %1 = arith.addi %c0_i32, %c8_i32_0 : i32
    %c1_i32 = arith.constant 1 : i32
    scf.for %arg5 = %c0_i32 to %1 step %c1_i32  : i32 {
      %46 = arith.addi %0, %arg5 : i32
      %c4_i32 = arith.constant 4 : i32
      %47 = arith.muli %46, %c4_i32 : i32
      %c0_i32_16 = arith.constant 0 : i32
      %48 = arith.addi %47, %c0_i32_16 : i32
      %49 = arith.index_cast %48 : i32 to index
      %50 = memref.load %arg1[%49] : memref<32xi32, #tpu.memory_space<smem>>
      %51 = arith.index_cast %50 : i32 to index
      %c0_17 = arith.constant 0 : index
      %52 = vector.load %arg2[%51, %c0_17] : memref<32x128xf32, #tpu.memory_space<vmem>>, vector<1x128xf32>
      %c0_i32_18 = arith.constant 0 : i32
      %53 = arith.addi %c0_i32_18, %arg5 : i32
      %54 = arith.index_cast %53 : i32 to index
      %c0_19 = arith.constant 0 : index
      %55 = vector.load %arg4[%54, %c0_19] : memref<32x128xf32, #tpu.memory_space<vmem>>, vector<1x128xf32>
      tpu.vector_store %arg4[%54, %c0_19], %52 {strides = array<i32>} : memref<32x128xf32, #tpu.memory_space<vmem>>, vector<1x128xf32>,
      %c1_i32_20 = arith.constant 1 : i32
      %56 = arith.addi %47, %c1_i32_20 : i32
      %57 = arith.index_cast %56 : i32 to index
      %58 = memref.load %arg1[%57] : memref<32xi32, #tpu.memory_space<smem>>
      %59 = arith.index_cast %58 : i32 to index
      %c0_21 = arith.constant 0 : index
      %60 = vector.load %arg2[%59, %c0_21] : memref<32x128xf32, #tpu.memory_space<vmem>>, vector<1x128xf32>
      %c8_i32_22 = arith.constant 8 : i32
      %61 = arith.addi %c8_i32_22, %arg5 : i32
      %62 = arith.index_cast %61 : i32 to index
      %c0_23 = arith.constant 0 : index
      %63 = vector.load %arg4[%62, %c0_23] : memref<32x128xf32, #tpu.memory_space<vmem>>, vector<1x128xf32>
      tpu.vector_store %arg4[%62, %c0_23], %60 {strides = array<i32>} : memref<32x128xf32, #tpu.memory_space<vmem>>, vector<1x128xf32>,
      %c2_i32 = arith.constant 2 : i32
      %64 = arith.addi %47, %c2_i32 : i32
      %65 = arith.index_cast %64 : i32 to index
      %66 = memref.load %arg1[%65] : memref<32xi32, #tpu.memory_space<smem>>
      %67 = arith.index_cast %66 : i32 to index
      %c0_24 = arith.constant 0 : index
      %68 = vector.load %arg2[%67, %c0_24] : memref<32x128xf32, #tpu.memory_space<vmem>>, vector<1x128xf32>
      %c16_i32 = arith.constant 16 : i32
      %69 = arith.addi %c16_i32, %arg5 : i32
      %70 = arith.index_cast %69 : i32 to index
      %c0_25 = arith.constant 0 : index
      %71 = vector.load %arg4[%70, %c0_25] : memref<32x128xf32, #tpu.memory_space<vmem>>, vector<1x128xf32>
      tpu.vector_store %arg4[%70, %c0_25], %68 {strides = array<i32>} : memref<32x128xf32, #tpu.memory_space<vmem>>, vector<1x128xf32>,
      %c3_i32 = arith.constant 3 : i32
      %72 = arith.addi %47, %c3_i32 : i32
      %73 = arith.index_cast %72 : i32 to index
      %74 = memref.load %arg1[%73] : memref<32xi32, #tpu.memory_space<smem>>
      %75 = arith.index_cast %74 : i32 to index
      %c0_26 = arith.constant 0 : index
      %76 = vector.load %arg2[%75, %c0_26] : memref<32x128xf32, #tpu.memory_space<vmem>>, vector<1x128xf32>
      %c24_i32 = arith.constant 24 : i32
      %77 = arith.addi %c24_i32, %arg5 : i32
      %78 = arith.index_cast %77 : i32 to index
      %c0_27 = arith.constant 0 : index
      %79 = vector.load %arg4[%78, %c0_27] : memref<32x128xf32, #tpu.memory_space<vmem>>, vector<1x128xf32>
      tpu.vector_store %arg4[%78, %c0_27], %76 {strides = array<i32>} : memref<32x128xf32, #tpu.memory_space<vmem>>, vector<1x128xf32>,
    }
    %c8_i32_1 = arith.constant 8 : i32
    %c0 = arith.constant 0 : index
    %c0_2 = arith.constant 0 : index
    %2 = vector.load %arg4[%c0, %c0_2] : memref<32x128xf32, #tpu.memory_space<vmem>>, vector<8x128xf32>
    %3 = arith.mulf %2, %2 : vector<8x128xf32>
    %c8 = arith.constant 8 : index
    %c0_3 = arith.constant 0 : index
    %4 = vector.load %arg4[%c8, %c0_3] : memref<32x128xf32, #tpu.memory_space<vmem>>, vector<8x128xf32>
    %5 = arith.addf %2, %4 : vector<8x128xf32>
    %6 = arith.mulf %4, %4 : vector<8x128xf32>
    %7 = arith.addf %3, %6 : vector<8x128xf32>
    %c16 = arith.constant 16 : index
    %c0_4 = arith.constant 0 : index
    %8 = vector.load %arg4[%c16, %c0_4] : memref<32x128xf32, #tpu.memory_space<vmem>>, vector<8x128xf32>
    %9 = arith.addf %5, %8 : vector<8x128xf32>
    %10 = arith.mulf %8, %8 : vector<8x128xf32>
    %11 = arith.addf %7, %10 : vector<8x128xf32>
    %c24 = arith.constant 24 : index
    %c0_5 = arith.constant 0 : index
    %12 = vector.load %arg4[%c24, %c0_5] : memref<32x128xf32, #tpu.memory_space<vmem>>, vector<8x128xf32>
    %13 = arith.addf %9, %12 : vector<8x128xf32>
    %14 = arith.mulf %12, %12 : vector<8x128xf32>
    %15 = arith.addf %11, %14 : vector<8x128xf32>
    %16 = tpu.iota {dimensions = array<i32: 1>} : vector<8x128xi32>
    %c32_i32 = arith.constant 32 : i32
    %17 = vector.broadcast %c32_i32 : i32 to vector<8x128xi32>
    %18 = arith.cmpi slt, %16, %17 : vector<8x128xi32>
    %19 = arith.mulf %13, %13 : vector<8x128xf32>
    %20 = arith.subf %19, %15 : vector<8x128xf32>
    %cst = arith.constant 0.000000e+00 : f32
    %21 = vector.broadcast %cst : f32 to vector<8x128xf32>
    %22 = arith.select %18, %20, %21 : vector<8x128xi1>, vector<8x128xf32>
    %cst_6 = arith.constant dense<0.000000e+00> : vector<8xf32>
    %23 = vector.multi_reduction <add>, %22, %cst_6 [1] : vector<8x128xf32> to vector<8xf32>
    %24 = vector.shape_cast %23 : vector<8xf32> to vector<8x1xf32>
    %cst_7 = arith.constant 5.000000e-01 : f32
    %25 = vector.broadcast %cst_7 : f32 to vector<8x1xf32>
    %26 = arith.mulf %25, %24 : vector<8x1xf32>
    %c32_i32_8 = arith.constant 32 : i32
    %27 = vector.broadcast %c32_i32_8 : i32 to vector<8x128xi32>
    %28 = arith.cmpi eq, %16, %27 : vector<8x128xi32>
    %cst_9 = arith.constant 0.000000e+00 : f32
    %29 = vector.broadcast %cst_9 : f32 to vector<8x128xf32>
    %30 = arith.select %28, %13, %29 : vector<8x128xi1>, vector<8x128xf32>
    %cst_10 = arith.constant dense<0.000000e+00> : vector<8xf32>
    %31 = vector.multi_reduction <add>, %30, %cst_10 [1] : vector<8x128xf32> to vector<8xf32>
    %32 = vector.shape_cast %31 : vector<8xf32> to vector<8x1xf32>
    %33 = tpu.iota {dimensions = array<i32: 1>} : vector<8x128xi32>
    %c0_i32_11 = arith.constant 0 : i32
    %34 = vector.broadcast %c0_i32_11 : i32 to vector<8x128xi32>
    %35 = arith.cmpi eq, %33, %34 : vector<8x128xi32>
    %c1_i32_12 = arith.constant 1 : i32
    %36 = vector.broadcast %c1_i32_12 : i32 to vector<8x128xi32>
    %37 = arith.cmpi eq, %33, %36 : vector<8x128xi32>
    %cst_13 = arith.constant 0.000000e+00 : f32
    %38 = vector.shape_cast %32 : vector<8x1xf32> to vector<8x1xf32>
    %39 = vector.broadcast %38 : vector<8x1xf32> to vector<8x128xf32>
    %40 = vector.broadcast %cst_13 : f32 to vector<8x128xf32>
    %41 = arith.select %37, %39, %40 : vector<8x128xi1>, vector<8x128xf32>
    %42 = vector.shape_cast %26 : vector<8x1xf32> to vector<8x1xf32>
    %43 = vector.broadcast %42 : vector<8x1xf32> to vector<8x128xf32>
    %44 = arith.select %35, %43, %41 : vector<8x128xi1>, vector<8x128xf32>
    %c0_14 = arith.constant 0 : index
    %c0_15 = arith.constant 0 : index
    %45 = vector.load %arg3[%c0_14, %c0_15] : memref<8x128xf32, #tpu.memory_space<vmem>>, vector<8x128xf32>
    tpu.vector_store %arg3[%c0_14, %c0_15], %44 {strides = array<i32>} : memref<8x128xf32, #tpu.memory_space<vmem>>, vector<8x128xf32>,
    return
  }
  func.func @transform_0(%arg0: i32, %arg1: memref<32xi32, #tpu.memory_space<smem>>) -> (i32, i32) {
    %c0_i32 = arith.constant 0 : i32
    %c0_i32_0 = arith.constant 0 : i32
    %c0_i32_1 = arith.constant 0 : i32
    return %c0_i32, %c0_i32_0 : i32, i32
  }
  func.func @transform_1(%arg0: i32, %arg1: memref<32xi32, #tpu.memory_space<smem>>) -> (i32, i32) {
    %c0_i32 = arith.constant 0 : i32
    %c0_i32_0 = arith.constant 0 : i32
    return %arg0, %c0_i32 : i32, i32
  }
}

</mosaic_0001>

<bundles_post_ra>
// kernel: tpu_custom_call.1
= control target key start
LH: loop header
LB: loop body
LE: loop exit
PB: predicated region body
PF: predicated region fallthrough
CT: control target
= control target key end

     0   :  { %s267_s0 = inlined_call_operand.hbm [shape: s32[32], index: 0, kind: input, shape index: {}]   ;;  %s268_s1 = inlined_call_operand.hbm [shape: f32[32,128], index: 1, kind: input, shape index: {}]   ;;  %s269_s2 = inlined_call_operand.hbm [shape: f32[8,128], index: 2, kind: output, shape index: {}]  }
   0x1   :  { %s143_s11 = scalar_lea.hbm %s267_s0, 16 }
   0x2   :  { %p144_p0 = scmp.ne.s32.totalorder %s267_s0, %s143_s11  ;;  %p147_p1 = scmp.lt.u32.totalorder %s143_s11, %s267_s0 }
   0x4   :  { %p149_p2 = pnand %p147_p1, %p144_p0 }
   0x6   :  { %152 = shalt.err (!%p149_p2)  }
   0x7   :  { %s211_s16 = smov [#allocation4]  }
   0x8   :  { %8 = dma.hbm_to_smem %s267_s0, 16, %s211_s16, [#allocation3] }
   0x9   :  { %201 = dma.done.wait [#allocation3], 16 }
   0xa   :  { %202 = vsyncadd [#allocation3], 4294967280 }
   0xb   :  { %10 = sfence }
   0xc   :  { %11 = vsyncpa [#allocation6], 0 }
   0xd   :  { %12 = vsyncpa [#allocation7], 0  ;;  %s212_s19 = smov [#allocation5]   ;;  %s153_s23 = scalar_lea.hbm %s268_s1, 512 }
   0xe   :  { %s18_s20 = sshll.u32 %s212_s19, 4  ;;  %p154_p3 = scmp.ne.s32.totalorder %s268_s1, %s153_s23  ;;  %s19_s20 = int_to_ptr.vmem [resolvable:$true] %s18_s20 }
   0xf   :  { %p157_p4 = scmp.lt.u32.totalorder %s153_s23, %s268_s1 }
  0x11   :  { %p159_p5 = pnand %p157_p4, %p154_p3 }
  0x13   :  { %162 = shalt.err (!%p159_p5)
}
  0x14   :  { %s163_s0 = scalar_lea.vmem %s19_s20, 512  ;;  %p168_p7 = scmp.lt.s32.totalorder %s19_s20, %s19_s20 }
  0x15   :  { %p164_p6 = scmp.ne.s32.totalorder %s19_s20, %s163_s0  ;;  %p169_p8 = scmp.lt.s32.totalorder %s163_s0, %s163_s0 }
  0x17   :  { %p170_p9 = por %p169_p8, %p168_p7 }
  0x19   :  { %p171_p10 = pnand %p170_p9, %p164_p6 }
  0x1b   :  { %174 = shalt.err (!%p171_p10)
}
  0x1c   :  { %s213_s28 = smov 128   ;;  %s214_s29 = smov 8  }
  0x1d   :  { %24 = dma.hbm_to_vmem [thread:$0]  %s268_s1, 512, %s19_s20, [#allocation6], %s213_s28, %s213_s28, %s214_s29  }
  0x1e   :  { %203 = dma.done.wait [#allocation6], 512  }
  0x1f   :  { %204 = vsyncadd [#allocation6], 4294966784  ;;  %s207_s4 = smov 0  }
  0x20 LB: > { %s126_s5 = sshll.u32 %s209_s4, 2  ;;  %s40_s14 = scalar_lea.vmem [#allocation2], %s209_s4  ;;  %s209_s4 = sphi %s207_s4, %s34_s4  }
  0x21   : > { %s37_s6 = sld [smem:[#allocation4 + %s126_s5]]  ;;  %s42_s7 = sadd.s32 1, %s126_s5 }
  0x22   : > { %s43_s8 = sld [smem:[#allocation4 + %s42_s7]]  ;;  %s49_s9 = sadd.s32 2, %s126_s5 }
  0x23   : > { %s50_s10 = sld [smem:[#allocation4 + %s49_s9]]  ;;  %s56_s11 = sadd.s32 3, %s126_s5 }
  0x24   : > { %s57_s12 = sld [smem:[#allocation4 + %s56_s11]]  ;;  %s34_s4 = sadd.s32 1, %s209_s4  }
  0x25   : > { %p31_p11 = scmp.ge.s32.totalorder %s34_s4, 8  }
  0x26   :  { %v77_v7 = vlaneseq (%p31_p11)  ;;  %s215_s17 = smov (%p31_p11), [#allocation8]  }
  0x27   : > { %s38_s13 = scalar_lea.vmem [#allocation5], %s37_s6  ;;  %33 = sbr.rel (!%p31_p11) target bundleno = 32 (0x20), region = 43 }
  0x28   : > { %v39_v0 = vld [vmem:[%s38_s13] sm:$0x1]  ;;  %s44_s15 = scalar_lea.vmem [#allocation5], %s43_s8  ;;  %v78_v16 = vand.u32 (%p31_p11), 127, %v77_v7  ;;  %s101_s18 = sshll.u32 (%p31_p11), %s215_s17, 4  ;;  %s102_s18 = int_to_ptr.vmem [resolvable:$true] %s101_s18 }
  0x29   : > { %41 = vst [vmem:[%s40_s14] sm:$0x1] %v39_v0  ;;  %v45_v1 = vld [vmem:[%s44_s15] sm:$0x1]  ;;  %s51_s1 = scalar_lea.vmem [#allocation5], %s50_s10  ;;  %s175_s19 = scalar_lea.vmem (%p31_p11), %s102_s18, 128 }
  0x2a   : > { %127 = vst [vmem:[%s40_s14 + $0x8] sm:$0x1] %v45_v1  ;;  %v52_v2 = vld [vmem:[%s51_s1] sm:$0x1]  ;;  %s58_s16 = scalar_lea.vmem [#allocation5], %s57_s12  ;;  %vm79_vm0 = vcmp.lt.s32.totalorder (%p31_p11), %v78_v16, 32  ;;  %p176_p12 = scmp.ne.s32.totalorder (%p31_p11), %s102_s18, %s175_s19 }
  0x2b   : > { %128 = vst [vmem:[%s40_s14 + $0x10] sm:$0x1] %v52_v2  ;;  %v59_v3 = vld [vmem:[%s58_s16] sm:$0x1]  ;;  %vm86_vm1 = vcmp.eq.s32.totalorder (%p31_p11), %v78_v16, 32  ;;  %vm91_vm2 = vcmp.eq.s32.totalorder (%p31_p11), %v78_v16, 1  ;;  %p180_p13 = scmp.lt.s32.totalorder (%p31_p11), %s102_s18, %s102_s18  ;;  %p181_p0 = scmp.lt.s32.totalorder (%p31_p11), %s175_s19, %s175_s19 }
  0x2c   : > { %129 = vst [vmem:[%s40_s14 + $0x18] sm:$0x1] %v59_v3  ;;  %vm90_vm3 = vcmp.eq.s32.totalorder (%p31_p11), %v78_v16, 0 }
  0x2d   :  { %p182_p1 = por (%p31_p11), %p181_p0, %p180_p13 }
  0x2f   :  { %p183_p2 = pnand %p182_p1, %p176_p12 }
  0x33   :  { %v63_v4 = vld [vmem:[#allocation2] sm:$0xff]  ;;  %v65_v5 = vld [vmem:[#allocation2 + $0x8] sm:$0xff]  ;;  %v69_v6 = vld [vmem:[#allocation2 + $0x10] sm:$0xff] }
  0x34   :  { %v64_v8 = vmul.f32 %v63_v4, %v63_v4  ;;  %v66_v9 = vadd.f32 %v65_v5, %v63_v4  ;;  %v67_v10 = vmul.f32 %v65_v5, %v65_v5  ;;  %v71_v11 = vmul.f32 %v69_v6, %v69_v6  ;;  %v73_v12 = vld [vmem:[#allocation2 + $0x18] sm:$0xff] }
  0x35   :  { %v75_v15 = vmul.f32 %v73_v12, %v73_v12 }
  0x36   :  { %v68_v13 = vadd.f32 %v67_v10, %v64_v8  ;;  %v70_v14 = vadd.f32 %v69_v6, %v66_v9 }
  0x38   :  { %v72_v17 = vadd.f32 %v71_v11, %v68_v13  ;;  %v74_v18 = vadd.f32 %v73_v12, %v70_v14 }
  0x3a   :  { %v76_v19 = vadd.f32 %v75_v15, %v72_v17  ;;  %v80_v20 = vmul.f32 %v74_v18, %v74_v18  ;;  %v87_v23 = vsel %vm86_vm1, %v74_v18, 0.0 }
  0x3c   :  { %v81_v21 = vsub.f32 %v80_v20, %v76_v19 }
  0x3e   :  { %v82_v22 = vsel %vm79_vm0, %v81_v21, 0.0 }
  0x3f   :  { %83 = vadd.xlane.f32.xlu0 %v82_v22 }
  0x43   :  { %88 = vadd.xlane.f32.xlu0 %v87_v23 }
  0xcc   :  { %v84_v24 = vpop.xlane.xlu0 %83 }
  0xcd   :  { %v85_v25 = vmul.f32 0.5, %v84_v24 }
  0xd0   :  { %v89_v26 = vpop.xlane.xlu0 %88 }
  0xd1   :  { %v92_v27 = vsel %vm91_vm2, %v89_v26, 0.0 }
  0xd2   :  { %v93_v28 = vsel %vm90_vm3, %v85_v25, %v92_v27 }
  0xd3   :  { %94 = vst [vmem:[#allocation8] sm:$0xff] %v93_v28 }
  0xd4   :  { %186 = shalt.err (!%p183_p2)
}
  0xd5   :  { %s187_s22 = scalar_lea.hbm %s269_s2, 128 }
  0xd6   :  { %p188_p3 = scmp.ne.s32.totalorder %s269_s2, %s187_s22  ;;  %p191_p4 = scmp.lt.u32.totalorder %s187_s22, %s269_s2 }
  0xd8   :  { %p193_p5 = pnand %p191_p4, %p188_p3 }
  0xda   :  { %196 = shalt.err (!%p193_p5)
}
  0xdb   :  { %104 = dma.vmem_to_hbm [thread:$0]  %s102_s18, 128, %s269_s2, [#allocation7]  }
  0xdc   :  { %205 = dma.done.wait [#allocation7], 128  }
  0xdd   :  { %206 = vsyncadd [#allocation7], 4294967168 }
  0xde   :  { %108 = vsyncpa [#allocation6], 1 }
  0xdf   :  { %109 = vsyncpa [#allocation7], 1 }

</bundles_post_ra>
